<compile_context>
chip_gen: v5e
topology: v5e:2x2
jax: 0.10.0
libtpu: 0.0.40
codegen_flags: <defaults>
</compile_context>

<pallas_src>
import functools

import jax
import jax.numpy as jnp
from jax import lax
from jax.experimental import pallas as pl
from jax.experimental.pallas import tpu as pltpu


def _mmd_loss_kernel(zp_i_ref, zp_j_ref, zq_i_ref, zq_j_ref, x_ref, xh_ref,
                     out_ref, acc_ref, *, alpha, reduction, batch, in_features):
    i = pl.program_id(0)
    j = pl.program_id(1)
    n_j = pl.num_programs(1)
    step = i * n_j + j
    last_step = pl.num_programs(0) * n_j - 1

    @pl.when(step == 0)
    def _init():
        acc_ref[0] = jnp.float32(0.0)   # sum k(zp, zp)
        acc_ref[1] = jnp.float32(0.0)   # sum k(zq, zq)
        acc_ref[2] = jnp.float32(0.0)   # sum k(zp, zq)
        acc_ref[3] = jnp.float32(0.0)   # sum (X - X_hat)^2

    feat = zp_i_ref.shape[-1]
    neg_inv_feat = jnp.float32(-1.0 / feat)

    def tile_gram_sum(a, b, sq_a, sq_b):
        # a, b: [bb, F] in native dtype (bf16 stays bf16 on the MXU).
        # Contract both on the last (lane) axis -> no explicit b transpose.
        ab = lax.dot_general(a, b, (((1,), (1,)), ((), ())),
                             preferred_element_type=jnp.float32)       # [bb, bb]
        d2 = jnp.maximum(sq_a + sq_b.T - 2.0 * ab, 0.0)
        k = jnp.exp(d2 * neg_inv_feat)
        rows = jnp.sum(k, axis=-1, keepdims=True)                      # lane reduce
        return jnp.sum(rows)                                           # scalar

    zp_i = zp_i_ref[...]
    zq_j = zq_j_ref[...]
    zp_i_f = zp_i.astype(jnp.float32)
    zq_j_f = zq_j.astype(jnp.float32)
    sq_zp_i = jnp.sum(zp_i_f * zp_i_f, axis=-1, keepdims=True)         # [bb, 1]
    sq_zq_j = jnp.sum(zq_j_f * zq_j_f, axis=-1, keepdims=True)         # [bb, 1]

    # Cross term (not symmetric): every (i, j) tile.
    acc_ref[2] = acc_ref[2] + tile_gram_sum(zp_i, zq_j, sq_zp_i, sq_zq_j)

    # Self terms: only i <= j tiles; off-diagonal tiles counted twice.
    @pl.when(i <= j)
    def _self_terms():
        zp_j = zp_j_ref[...]
        zq_i = zq_i_ref[...]
        zp_j_f = zp_j.astype(jnp.float32)
        zq_i_f = zq_i.astype(jnp.float32)
        sq_zp_j = jnp.sum(zp_j_f * zp_j_f, axis=-1, keepdims=True)
        sq_zq_i = jnp.sum(zq_i_f * zq_i_f, axis=-1, keepdims=True)
        w = jnp.where(i < j, jnp.float32(2.0), jnp.float32(1.0))
        acc_ref[0] = acc_ref[0] + w * tile_gram_sum(zp_i, zp_j, sq_zp_i, sq_zp_j)
        acc_ref[1] = acc_ref[1] + w * tile_gram_sum(zq_i, zq_j, sq_zq_i, sq_zq_j)

    # Reconstruction term: one batch block per i, computed once (at j == 0).
    @pl.when(j == 0)
    def _recon():
        d = x_ref[...].astype(jnp.float32) - xh_ref[...].astype(jnp.float32)
        acc_ref[3] = acc_ref[3] + jnp.sum(jnp.sum(d * d, axis=-1, keepdims=True))

    @pl.when(step == last_step)
    def _finalize():
        inv_b2 = jnp.float32(1.0 / (batch * batch))
        mmd = (acc_ref[0] + acc_ref[1] - 2.0 * acc_ref[2]) * inv_b2
        recon = acc_ref[3]
        if reduction == "mean":
            recon = recon * jnp.float32(1.0 / (batch * in_features))
        out_ref[0, 0] = recon + jnp.float32(alpha) * mmd


def _pick_block_batch(batch, max_block=256):
    """Largest batch-block <= max_block that divides B and satisfies the
    (8, 128) sublane constraint (multiple of 8, or the whole batch)."""
    if batch <= max_block:
        return batch
    start = max_block - (max_block % 8)
    for bb in range(start, 7, -8):
        if batch % bb == 0:
            return bb
    # No suitable divisor: fall back to a single (large) block -- still correct.
    return batch


def mmd_loss(z_prior, z_posterior, X, X_hat, *, alpha=1.0, reduction="mean",
             block_batch=None):
    """Pallas implementation of MMDLoss.forward with the standard MMD-VAE RBF
    kernel k(x, y) = exp(-||x - y||^2 / features). Returns a float32 scalar."""
    if reduction not in ("mean", "sum"):
        raise ValueError("Reduction parameter must be one of 'mean' or 'sum'.")
    assert z_prior.ndim == 2 and z_prior.shape == z_posterior.shape
    assert X.ndim == 2 and X.shape == X_hat.shape
    assert z_prior.shape[0] == X.shape[0]

    B, F = z_prior.shape
    D = X.shape[1]

    if block_batch is None:
        bb = _pick_block_batch(B)
    else:
        bb = int(block_batch)
        if B % bb != 0 or not (bb == B or bb % 8 == 0):
            raise ValueError("block_batch must divide batch and be a multiple "
                             "of 8 (or equal to batch).")
    n_blk = B // bb

    kernel = functools.partial(
        _mmd_loss_kernel, alpha=float(alpha), reduction=reduction,
        batch=B, in_features=D)

    out = pl.pallas_call(
        kernel,
        out_shape=jax.ShapeDtypeStruct((1, 1), jnp.float32),
        grid=(n_blk, n_blk),
        in_specs=[
            pl.BlockSpec((bb, F), lambda i, j: (i, 0)),   # z_prior,     row block
            pl.BlockSpec((bb, F), lambda i, j: (j, 0)),   # z_prior,     col block
            pl.BlockSpec((bb, F), lambda i, j: (i, 0)),   # z_posterior, row block
            pl.BlockSpec((bb, F), lambda i, j: (j, 0)),   # z_posterior, col block
            pl.BlockSpec((bb, D), lambda i, j: (i, 0)),   # X,           row block
            pl.BlockSpec((bb, D), lambda i, j: (i, 0)),   # X_hat,       row block
        ],
        out_specs=pl.BlockSpec(memory_space=pltpu.SMEM),
        scratch_shapes=[pltpu.SMEM((4,), jnp.float32)],
        compiler_params=pltpu.CompilerParams(
            # Both grid axes reduce into the same scalar accumulators, so
            # neither can be megacore-parallel.
            dimension_semantics=("arbitrary", "arbitrary"),
            vmem_limit_bytes=32 * 1024 * 1024,
        ),
    )(z_prior, z_prior, z_posterior, z_posterior, X, X_hat)
    return out[0, 0]


if __name__ == "__main__":
    key = jax.random.PRNGKey(0)
    k1, k2, k3, k4 = jax.random.split(key, 4)

    # Small shapes; block_batch=8 still exercises a 4x4 tile grid
    # (i < j, i == j, i > j tiles and the j == 0 recon gate).
    B, F, D = 32, 32, 64
    z_prior = jax.random.normal(k1, (B, F), dtype=jnp.float32)
    z_posterior = jax.random.normal(k2, (B, F), dtype=jnp.float32)
    X = jax.random.normal(k3, (B, D), dtype=jnp.float32)
    X_hat = X + 0.1 * jax.random.normal(k4, (B, D), dtype=jnp.float32)

    # Pure-JAX reference (same math, outside Pallas).
    def ref_rbf_mean(a, b):
        d2 = (jnp.sum(a * a, -1, keepdims=True)
              + jnp.sum(b * b, -1, keepdims=True).T
              - 2.0 * a @ b.T)
        return jnp.mean(jnp.exp(-jnp.maximum(d2, 0.0) / a.shape[-1]))

    def ref_loss(reduction):
        mmd = (ref_rbf_mean(z_prior, z_prior)
               + ref_rbf_mean(z_posterior, z_posterior)
               - 2.0 * ref_rbf_mean(z_prior, z_posterior))
        sq = (X - X_hat) ** 2
        recon = jnp.mean(sq) if reduction == "mean" else jnp.sum(sq)
        return recon + 1.0 * mmd

    ok = True
    for reduction in ("mean", "sum"):
        loss = mmd_loss(z_prior, z_posterior, X, X_hat,
                        alpha=1.0, reduction=reduction, block_batch=8)
        loss = jax.block_until_ready(loss)
        ref = ref_loss(reduction)
        ok = ok and bool(jnp.allclose(loss, ref, rtol=1e-5, atol=1e-5))
    assert ok
    print("KERNEL_OK")
</pallas_src>

<mosaic_0001>
module attributes {stable_mosaic.version = 11 : i64} {
  func.func @_mmd_loss_kernel(%arg0: i32, %arg1: i32, %arg2: memref<8x32xf32, #tpu.memory_space<vmem>>, %arg3: memref<8x32xf32, #tpu.memory_space<vmem>>, %arg4: memref<8x32xf32, #tpu.memory_space<vmem>>, %arg5: memref<8x32xf32, #tpu.memory_space<vmem>>, %arg6: memref<8x64xf32, #tpu.memory_space<vmem>>, %arg7: memref<8x64xf32, #tpu.memory_space<vmem>>, %arg8: memref<1x1xf32, #tpu.memory_space<smem>>, %arg9: memref<4xf32, #tpu.memory_space<smem>>) attributes {dimension_semantics = [#tpu.dimension_semantics<arbitrary>, #tpu.dimension_semantics<arbitrary>], iteration_bounds = array<i64: 4, 4>, scalar_prefetch = 0 : i64, scratch_operands = 1 : i64, tpu.core_type = #tpu.core_type<tc>, window_params = [{transform_indices = @transform_0, window_bounds = array<i64: 8, 32>}, {transform_indices = @transform_1, window_bounds = array<i64: 8, 32>}, {transform_indices = @transform_2, window_bounds = array<i64: 8, 32>}, {transform_indices = @transform_3, window_bounds = array<i64: 8, 32>}, {transform_indices = @transform_4, window_bounds = array<i64: 8, 64>}, {transform_indices = @transform_5, window_bounds = array<i64: 8, 64>}, {transform_indices = @transform_6, window_bounds = array<i64: 1, 1>}]} {
    %c4_i32 = arith.constant 4 : i32
    %0 = arith.muli %arg0, %c4_i32 : i32
    %1 = arith.addi %0, %arg1 : i32
    %c0_i32 = arith.constant 0 : i32
    %2 = arith.cmpi eq, %1, %c0_i32 : i32
    %3 = arith.extui %2 : i1 to i32
    %c0_i32_0 = arith.constant 0 : i32
    %4 = arith.cmpi ne, %3, %c0_i32_0 : i32
    scf.if %4 {
      %cst_17 = arith.constant 0.000000e+00 : f32
      %c0_18 = arith.constant 0 : index
      %44 = memref.load %arg9[%c0_18] : memref<4xf32, #tpu.memory_space<smem>>
      memref.store %cst_17, %arg9[%c0_18] : memref<4xf32, #tpu.memory_space<smem>>
      %cst_19 = arith.constant 0.000000e+00 : f32
      %c1 = arith.constant 1 : index
      %45 = memref.load %arg9[%c1] : memref<4xf32, #tpu.memory_space<smem>>
      memref.store %cst_19, %arg9[%c1] : memref<4xf32, #tpu.memory_space<smem>>
      %cst_20 = arith.constant 0.000000e+00 : f32
      %c2_21 = arith.constant 2 : index
      %46 = memref.load %arg9[%c2_21] : memref<4xf32, #tpu.memory_space<smem>>
      memref.store %cst_20, %arg9[%c2_21] : memref<4xf32, #tpu.memory_space<smem>>
      %cst_22 = arith.constant 0.000000e+00 : f32
      %c3 = arith.constant 3 : index
      %47 = memref.load %arg9[%c3] : memref<4xf32, #tpu.memory_space<smem>>
      memref.store %cst_22, %arg9[%c3] : memref<4xf32, #tpu.memory_space<smem>>
    } else {
    }
    %c0 = arith.constant 0 : index
    %c0_1 = arith.constant 0 : index
    %5 = vector.load %arg2[%c0, %c0_1] : memref<8x32xf32, #tpu.memory_space<vmem>>, vector<8x32xf32>
    %c0_2 = arith.constant 0 : index
    %c0_3 = arith.constant 0 : index
    %6 = vector.load %arg5[%c0_2, %c0_3] : memref<8x32xf32, #tpu.memory_space<vmem>>, vector<8x32xf32>
    %7 = arith.mulf %5, %5 : vector<8x32xf32>
    %cst = arith.constant dense<0.000000e+00> : vector<8xf32>
    %8 = vector.multi_reduction <add>, %7, %cst [1] : vector<8x32xf32> to vector<8xf32>
    %9 = vector.shape_cast %8 : vector<8xf32> to vector<8x1xf32>
    %10 = arith.mulf %6, %6 : vector<8x32xf32>
    %cst_4 = arith.constant dense<0.000000e+00> : vector<8xf32>
    %11 = vector.multi_reduction <add>, %10, %cst_4 [1] : vector<8x32xf32> to vector<8xf32>
    %12 = vector.shape_cast %11 : vector<8xf32> to vector<8x1xf32>
    %c2 = arith.constant 2 : index
    %13 = memref.load %arg9[%c2] : memref<4xf32, #tpu.memory_space<smem>>
    %cst_5 = arith.constant dense<0.000000e+00> : vector<8x8xf32>
    %14 = tpu.matmul %5, %6, %cst_5 {dimension_numbers = #tpu.dot_dimension_numbers<[1], [1], [0], [0], [0, 0, 1, 0], [], []>} : vector<8x32xf32>, vector<8x32xf32>, vector<8x8xf32> -> vector<8x8xf32>
    %15 = tpu.transpose %12, [1, 0] : vector<8x1xf32> -> vector<1x8xf32>
    %16 = vector.broadcast %9 : vector<8x1xf32> to vector<8x8xf32>
    %17 = vector.broadcast %15 : vector<1x8xf32> to vector<8x8xf32>
    %18 = arith.addf %16, %17 : vector<8x8xf32>
    %cst_6 = arith.constant 2.000000e+00 : f32
    %19 = vector.broadcast %cst_6 : f32 to vector<8x8xf32>
    %20 = arith.mulf %19, %14 : vector<8x8xf32>
    %21 = arith.subf %18, %20 : vector<8x8xf32>
    %cst_7 = arith.constant 0.000000e+00 : f32
    %22 = vector.broadcast %cst_7 : f32 to vector<8x8xf32>
    %23 = arith.maximumf %21, %22 : vector<8x8xf32>
    %cst_8 = arith.constant -3.125000e-02 : f32
    %24 = vector.broadcast %cst_8 : f32 to vector<8x8xf32>
    %25 = arith.mulf %23, %24 : vector<8x8xf32>
    %26 = math.exp %25 : vector<8x8xf32>
    %cst_9 = arith.constant dense<0.000000e+00> : vector<8xf32>
    %27 = vector.multi_reduction <add>, %26, %cst_9 [1] : vector<8x8xf32> to vector<8xf32>
    %28 = vector.shape_cast %27 : vector<8xf32> to vector<8x1xf32>
    %29 = vector.shape_cast %28 : vector<8x1xf32> to vector<1x8x1xf32>
    %cst_10 = arith.constant dense<0.000000e+00> : vector<1xf32>
    %30 = vector.multi_reduction <add>, %29, %cst_10 [1, 2] : vector<1x8x1xf32> to vector<1xf32>
    %31 = vector.shape_cast %30 : vector<1xf32> to vector<1x1x1xf32>
    %32 = vector.extract %31[0, 0, 0] : f32 from vector<1x1x1xf32>
    %33 = arith.addf %13, %32 : f32
    %c2_11 = arith.constant 2 : index
    %34 = memref.load %arg9[%c2_11] : memref<4xf32, #tpu.memory_space<smem>>
    memref.store %33, %arg9[%c2_11] : memref<4xf32, #tpu.memory_space<smem>>
    %35 = arith.cmpi sle, %arg0, %arg1 : i32
    %36 = arith.extui %35 : i1 to i32
    %cst_12 = arith.constant -3.125000e-02 : f32
    %c0_i32_13 = arith.constant 0 : i32
    %37 = arith.cmpi ne, %36, %c0_i32_13 : i32
    scf.if %37 {
      %c0_17 = arith.constant 0 : index
      %c0_18 = arith.constant 0 : index
      %44 = vector.load %arg3[%c0_17, %c0_18] : memref<8x32xf32, #tpu.memory_space<vmem>>, vector<8x32xf32>
      %c0_19 = arith.constant 0 : index
      %c0_20 = arith.constant 0 : index
      %45 = vector.load %arg4[%c0_19, %c0_20] : memref<8x32xf32, #tpu.memory_space<vmem>>, vector<8x32xf32>
      %46 = arith.mulf %44, %44 : vector<8x32xf32>
      %cst_21 = arith.constant dense<0.000000e+00> : vector<8xf32>
      %47 = vector.multi_reduction <add>, %46, %cst_21 [1] : vector<8x32xf32> to vector<8xf32>
      %48 = vector.shape_cast %47 : vector<8xf32> to vector<8x1xf32>
      %49 = arith.mulf %45, %45 : vector<8x32xf32>
      %cst_22 = arith.constant dense<0.000000e+00> : vector<8xf32>
      %50 = vector.multi_reduction <add>, %49, %cst_22 [1] : vector<8x32xf32> to vector<8xf32>
      %51 = vector.shape_cast %50 : vector<8xf32> to vector<8x1xf32>
      %52 = arith.cmpi slt, %arg0, %arg1 : i32
      %cst_23 = arith.constant 2.000000e+00 : f32
      %cst_24 = arith.constant 1.000000e+00 : f32
      %53 = arith.select %52, %cst_23, %cst_24 : f32
      %c0_25 = arith.constant 0 : index
      %54 = memref.load %arg9[%c0_25] : memref<4xf32, #tpu.memory_space<smem>>
      %cst_26 = arith.constant dense<0.000000e+00> : vector<8x8xf32>
      %55 = tpu.matmul %5, %44, %cst_26 {dimension_numbers = #tpu.dot_dimension_numbers<[1], [1], [0], [0], [0, 0, 1, 0], [], []>} : vector<8x32xf32>, vector<8x32xf32>, vector<8x8xf32> -> vector<8x8xf32>
      %56 = tpu.transpose %48, [1, 0] : vector<8x1xf32> -> vector<1x8xf32>
      %57 = vector.broadcast %9 : vector<8x1xf32> to vector<8x8xf32>
      %58 = vector.broadcast %56 : vector<1x8xf32> to vector<8x8xf32>
      %59 = arith.addf %57, %58 : vector<8x8xf32>
      %cst_27 = arith.constant 2.000000e+00 : f32
      %60 = vector.broadcast %cst_27 : f32 to vector<8x8xf32>
      %61 = arith.mulf %60, %55 : vector<8x8xf32>
      %62 = arith.subf %59, %61 : vector<8x8xf32>
      %cst_28 = arith.constant 0.000000e+00 : f32
      %63 = vector.broadcast %cst_28 : f32 to vector<8x8xf32>
      %64 = arith.maximumf %62, %63 : vector<8x8xf32>
      %65 = vector.broadcast %cst_12 : f32 to vector<8x8xf32>
      %66 = arith.mulf %64, %65 : vector<8x8xf32>
      %67 = math.exp %66 : vector<8x8xf32>
      %cst_29 = arith.constant dense<0.000000e+00> : vector<8xf32>
      %68 = vector.multi_reduction <add>, %67, %cst_29 [1] : vector<8x8xf32> to vector<8xf32>
      %69 = vector.shape_cast %68 : vector<8xf32> to vector<8x1xf32>
      %70 = vector.shape_cast %69 : vector<8x1xf32> to vector<1x8x1xf32>
      %cst_30 = arith.constant dense<0.000000e+00> : vector<1xf32>
      %71 = vector.multi_reduction <add>, %70, %cst_30 [1, 2] : vector<1x8x1xf32> to vector<1xf32>
      %72 = vector.shape_cast %71 : vector<1xf32> to vector<1x1x1xf32>
      %73 = vector.extract %72[0, 0, 0] : f32 from vector<1x1x1xf32>
      %74 = arith.mulf %53, %73 : f32
      %75 = arith.addf %54, %74 : f32
      %c0_31 = arith.constant 0 : index
      %76 = memref.load %arg9[%c0_31] : memref<4xf32, #tpu.memory_space<smem>>
      memref.store %75, %arg9[%c0_31] : memref<4xf32, #tpu.memory_space<smem>>
      %c1 = arith.constant 1 : index
      %77 = memref.load %arg9[%c1] : memref<4xf32, #tpu.memory_space<smem>>
      %cst_32 = arith.constant dense<0.000000e+00> : vector<8x8xf32>
      %78 = tpu.matmul %45, %6, %cst_32 {dimension_numbers = #tpu.dot_dimension_numbers<[1], [1], [0], [0], [0, 0, 1, 0], [], []>} : vector<8x32xf32>, vector<8x32xf32>, vector<8x8xf32> -> vector<8x8xf32>
      %79 = tpu.transpose %12, [1, 0] : vector<8x1xf32> -> vector<1x8xf32>
      %80 = vector.broadcast %51 : vector<8x1xf32> to vector<8x8xf32>
      %81 = vector.broadcast %79 : vector<1x8xf32> to vector<8x8xf32>
      %82 = arith.addf %80, %81 : vector<8x8xf32>
      %cst_33 = arith.constant 2.000000e+00 : f32
      %83 = vector.broadcast %cst_33 : f32 to vector<8x8xf32>
      %84 = arith.mulf %83, %78 : vector<8x8xf32>
      %85 = arith.subf %82, %84 : vector<8x8xf32>
      %cst_34 = arith.constant 0.000000e+00 : f32
      %86 = vector.broadcast %cst_34 : f32 to vector<8x8xf32>
      %87 = arith.maximumf %85, %86 : vector<8x8xf32>
      %88 = vector.broadcast %cst_12 : f32 to vector<8x8xf32>
      %89 = arith.mulf %87, %88 : vector<8x8xf32>
      %90 = math.exp %89 : vector<8x8xf32>
      %cst_35 = arith.constant dense<0.000000e+00> : vector<8xf32>
      %91 = vector.multi_reduction <add>, %90, %cst_35 [1] : vector<8x8xf32> to vector<8xf32>
      %92 = vector.shape_cast %91 : vector<8xf32> to vector<8x1xf32>
      %93 = vector.shape_cast %92 : vector<8x1xf32> to vector<1x8x1xf32>
      %cst_36 = arith.constant dense<0.000000e+00> : vector<1xf32>
      %94 = vector.multi_reduction <add>, %93, %cst_36 [1, 2] : vector<1x8x1xf32> to vector<1xf32>
      %95 = vector.shape_cast %94 : vector<1xf32> to vector<1x1x1xf32>
      %96 = vector.extract %95[0, 0, 0] : f32 from vector<1x1x1xf32>
      %97 = arith.mulf %53, %96 : f32
      %98 = arith.addf %77, %97 : f32
      %c1_37 = arith.constant 1 : index
      %99 = memref.load %arg9[%c1_37] : memref<4xf32, #tpu.memory_space<smem>>
      memref.store %98, %arg9[%c1_37] : memref<4xf32, #tpu.memory_space<smem>>
    } else {
    }
    %c0_i32_14 = arith.constant 0 : i32
    %38 = arith.cmpi eq, %arg1, %c0_i32_14 : i32
    %39 = arith.extui %38 : i1 to i32
    %c0_i32_15 = arith.constant 0 : i32
    %40 = arith.cmpi ne, %39, %c0_i32_15 : i32
    scf.if %40 {
      %c0_17 = arith.constant 0 : index
      %c0_18 = arith.constant 0 : index
      %44 = vector.load %arg6[%c0_17, %c0_18] : memref<8x64xf32, #tpu.memory_space<vmem>>, vector<8x64xf32>
      %c0_19 = arith.constant 0 : index
      %c0_20 = arith.constant 0 : index
      %45 = vector.load %arg7[%c0_19, %c0_20] : memref<8x64xf32, #tpu.memory_space<vmem>>, vector<8x64xf32>
      %46 = arith.subf %44, %45 : vector<8x64xf32>
      %c3 = arith.constant 3 : index
      %47 = memref.load %arg9[%c3] : memref<4xf32, #tpu.memory_space<smem>>
      %48 = arith.mulf %46, %46 : vector<8x64xf32>
      %cst_21 = arith.constant dense<0.000000e+00> : vector<8xf32>
      %49 = vector.multi_reduction <add>, %48, %cst_21 [1] : vector<8x64xf32> to vector<8xf32>
      %50 = vector.shape_cast %49 : vector<8xf32> to vector<8x1xf32>
      %51 = vector.shape_cast %50 : vector<8x1xf32> to vector<1x8x1xf32>
      %cst_22 = arith.constant dense<0.000000e+00> : vector<1xf32>
      %52 = vector.multi_reduction <add>, %51, %cst_22 [1, 2] : vector<1x8x1xf32> to vector<1xf32>
      %53 = vector.shape_cast %52 : vector<1xf32> to vector<1x1x1xf32>
      %54 = vector.extract %53[0, 0, 0] : f32 from vector<1x1x1xf32>
      %55 = arith.addf %47, %54 : f32
      %c3_23 = arith.constant 3 : index
      %56 = memref.load %arg9[%c3_23] : memref<4xf32, #tpu.memory_space<smem>>
      memref.store %55, %arg9[%c3_23] : memref<4xf32, #tpu.memory_space<smem>>
    } else {
    }
    %c15_i32 = arith.constant 15 : i32
    %41 = arith.cmpi eq, %1, %c15_i32 : i32
    %42 = arith.extui %41 : i1 to i32
    %c0_i32_16 = arith.constant 0 : i32
    %43 = arith.cmpi ne, %42, %c0_i32_16 : i32
    scf.if %43 {
      %c0_17 = arith.constant 0 : index
      %44 = memref.load %arg9[%c0_17] : memref<4xf32, #tpu.memory_space<smem>>
      %c1 = arith.constant 1 : index
      %45 = memref.load %arg9[%c1] : memref<4xf32, #tpu.memory_space<smem>>
      %46 = arith.addf %44, %45 : f32
      %c2_18 = arith.constant 2 : index
      %47 = memref.load %arg9[%c2_18] : memref<4xf32, #tpu.memory_space<smem>>
      %cst_19 = arith.constant 2.000000e+00 : f32
      %48 = arith.mulf %cst_19, %47 : f32
      %49 = arith.subf %46, %48 : f32
      %cst_20 = arith.constant 9.765625E-4 : f32
      %50 = arith.mulf %49, %cst_20 : f32
      %c3 = arith.constant 3 : index
      %51 = memref.load %arg9[%c3] : memref<4xf32, #tpu.memory_space<smem>>
      %cst_21 = arith.constant 4.8828125E-4 : f32
      %52 = arith.mulf %51, %cst_21 : f32
      %cst_22 = arith.constant 1.000000e+00 : f32
      %53 = arith.mulf %cst_22, %50 : f32
      %54 = arith.addf %52, %53 : f32
      %c0_23 = arith.constant 0 : index
      %c0_24 = arith.constant 0 : index
      %55 = memref.load %arg8[%c0_23, %c0_24] : memref<1x1xf32, #tpu.memory_space<smem>>
      memref.store %54, %arg8[%c0_23, %c0_24] : memref<1x1xf32, #tpu.memory_space<smem>>
    } else {
    }
    return
  }
  func.func @transform_0(%arg0: i32, %arg1: i32) -> (i32, i32) {
    %c0_i32 = arith.constant 0 : i32
    %c0_i32_0 = arith.constant 0 : i32
    return %arg0, %c0_i32 : i32, i32
  }
  func.func @transform_1(%arg0: i32, %arg1: i32) -> (i32, i32) {
    %c0_i32 = arith.constant 0 : i32
    %c0_i32_0 = arith.constant 0 : i32
    return %arg1, %c0_i32 : i32, i32
  }
  func.func @transform_2(%arg0: i32, %arg1: i32) -> (i32, i32) {
    %c0_i32 = arith.constant 0 : i32
    %c0_i32_0 = arith.constant 0 : i32
    return %arg0, %c0_i32 : i32, i32
  }
  func.func @transform_3(%arg0: i32, %arg1: i32) -> (i32, i32) {
    %c0_i32 = arith.constant 0 : i32
    %c0_i32_0 = arith.constant 0 : i32
    return %arg1, %c0_i32 : i32, i32
  }
  func.func @transform_4(%arg0: i32, %arg1: i32) -> (i32, i32) {
    %c0_i32 = arith.constant 0 : i32
    %c0_i32_0 = arith.constant 0 : i32
    return %arg0, %c0_i32 : i32, i32
  }
  func.func @transform_5(%arg0: i32, %arg1: i32) -> (i32, i32) {
    %c0_i32 = arith.constant 0 : i32
    %c0_i32_0 = arith.constant 0 : i32
    return %arg0, %c0_i32 : i32, i32
  }
  func.func @transform_6(%arg0: i32, %arg1: i32) -> (i32, i32) {
    %c0_i32 = arith.constant 0 : i32
    %c0_i32_0 = arith.constant 0 : i32
    %c0_i32_1 = arith.constant 0 : i32
    return %c0_i32, %c0_i32_0 : i32, i32
  }
}

</mosaic_0001>

<bundles_post_ra>
// kernel: tpu_custom_call.1
= control target key start
LH: loop header
LB: loop body
LE: loop exit
PB: predicated region body
PF: predicated region fallthrough
CT: control target
= control target key end

     0   :  { %s1778_s0 = inlined_call_operand.hbm [shape: f32[32,32], index: 0, kind: input, shape index: {}]   ;;  %s1779_s1 = inlined_call_operand.hbm [shape: f32[32,32], index: 1, kind: input, shape index: {}]   ;;  %s1780_s2 = inlined_call_operand.hbm [shape: f32[32,32], index: 2, kind: input, shape index: {}]   ;;  %s1781_s3 = inlined_call_operand.hbm [shape: f32[32,32], index: 3, kind: input, shape index: {}]   ;;  %s1782_s4 = inlined_call_operand.hbm [shape: f32[32,64], index: 4, kind: input, shape index: {}]   ;;  %s1783_s5 = inlined_call_operand.hbm [shape: f32[32,64], index: 5, kind: input, shape index: {}]   ;;  %s1784_s6 = inlined_call_operand.hbm [shape: f32[1,1], index: 6, kind: output, shape index: {}]  }
   0x1   :  { %1791 = sst [smem:[#allocation30_spill]] %s1778_s0 }
   0x2   :  { %1792 = sst [smem:[#allocation31_spill]] %s1779_s1 }
   0x3   :  { %1793 = sst [smem:[#allocation32_spill]] %s1780_s2 }
   0x4   :  { %1794 = sst [smem:[#allocation33_spill]] %s1781_s3 }
   0x5   :  { %1795 = sst [smem:[#allocation34_spill]] %s1784_s6 }
   0x6   :  { %11 = vsyncpa [#allocation4], 0 }
   0x7   :  { %13 = vsyncpa [#allocation4 + $0x1], 0 }
   0x8   :  { %14 = vsyncpa [#allocation7], 0 }
   0x9   :  { %16 = vsyncpa [#allocation7 + $0x1], 0 }
   0xa   :  { %17 = vsyncpa [#allocation10], 0 }
   0xb   :  { %19 = vsyncpa [#allocation10 + $0x1], 0 }
   0xc   :  { %20 = vsyncpa [#allocation13], 0 }
   0xd   :  { %22 = vsyncpa [#allocation13 + $0x1], 0 }
   0xe   :  { %23 = vsyncpa [#allocation5], 0  ;;  %s1477_s21 = smov 0   ;;  %s1479_s22 = smov 0  }
   0xf   :  { %s1481_s23 = smov 0   ;;  %s1483_s24 = smov 0  }
  0x10   :  { %s1485_s25 = smov 0   ;;  %s1487_s26 = smov 0  }
  0x11   :  { %s1489_s27 = smov 0   ;;  %s1491_s28 = smov 0  }
  0x12   :  { %s1493_s29 = smov 0   ;;  %s1495_s30 = smov 0  }
  0x13   :  { %s1497_s7 = smov 0  }
  0x14 LB: > { %1796 = sst [smem:[#allocation22_spill]] %s1418_s26  ;;  %s1531_s8 = sadd.s32 4294967295, %s1438_s7   ;;  %s1438_s7 = sphi %s1497_s7, %s29_s7   ;;  %s1434_s30 = sphi %s1495_s30, %s1825_s30   ;;  %s1430_s29 = sphi %s1493_s29, %s1824_s29   ;;  %s1426_s28 = sphi %s1491_s28, %s1823_s28   ;;  %s1422_s27 = sphi %s1489_s27, %s1822_s27   ;;  %s1418_s26 = sphi %s1487_s26, %s1821_s26   ;;  %s1414_s25 = sphi %s1485_s25, %s1830_s25   ;;  %s1410_s24 = sphi %s1483_s24, %s1829_s24   ;;  %s1406_s23 = sphi %s1481_s23, %s1828_s23   ;;  %s1402_s22 = sphi %s1479_s22, %s1827_s22   ;;  %s1398_s21 = sphi %s1477_s21, %s1826_s21  }
  0x15   : > { %1797 = sst [smem:[#allocation23_spill]] %s1422_s27  ;;  %s38_s9 = sadd.s32 1, %s1430_s29 }
  0x16   : > { %1798 = sst [smem:[#allocation24_spill]] %s1430_s29  ;;  %p1534_p0 = scmp.ge.s32.totalorder %s38_s9, 4 }
  0x17   : > { %1799 = sst [smem:[#allocation25_spill]] %s1434_s30  ;;  %p56_p1 = scmp.eq.s32.totalorder %s1438_s7, 0 }
  0x18   : > { %p62_p2 = scmp.eq.s32.totalorder %s1531_s8, 0  ;;  %s74_s11 = sadd.s32 1, %s1406_s23 }
  0x19   : > { %s1832_s9 = smov (%p1534_p0, %s38_s9), 0  ;;  %p81_p3 = scmp.ne.s32.totalorder %s1406_s23, %s1402_s22 }
  0x1a   : > { %1801 = sst [smem:[#allocation26_spill]] %s1832_s9  ;;  %p87_p4 = scmp.ne.s32.totalorder %s1402_s22, %s1398_s21 }
  0x1b   : > { %s71_s12 = ssub.s32 %s1430_s29, %s1832_s9  ;;  %p1552_p6 = por %p81_p3, %p56_p1 }
  0x1c   : > { %p72_p5 = scmp.eq.s32.totalorder %s71_s12, 0  ;;  %p1558_p7 = por %p87_p4, %p62_p2 }
  0x1d   : > { %p1027_p8 = scmp.lt.s32.totalorder %s1438_s7, 16  ;;  %s255_s16 = sand.u32 1, %s1438_s7  }
  0x1e   : > { %s1564_s15 = scalar_select %p72_p5, %s1406_s23, %s74_s11  }
  0x1f   : > { %s257_s17 = sand.u32 1, %s1406_s23   ;;  %s940_s19 = sshll.u32 %s1430_s29, 3 }
  0x20   : > { %1804 = sst [smem:[#allocation27_spill]] %s1564_s15  ;;  %s939_s18 = sshll.u32 %s257_s17, 3 }
  0x21   : > { %s1805_s1 = sld [smem:[#allocation31_spill]]  ;;  %s259_s9 = scalar_lea.vmem [#allocation6], %s939_s18 }
  0x22   : > { %s267_s6 = sshll.u32 %s259_s9, 4  ;;  %p1012_p9 = pnand %p1027_p8, %p1552_p6  ;;  %s268_s6 = int_to_ptr.vmem [resolvable:$true] %s267_s6 }
  0x23   : > { %p949_p10 = scmp.ge.s32.totalorder %s1438_s7, 1  ;;  %p348_p11 = scmp.lt.s32.totalorder %s1438_s7, 17 }
  0x24   : > { %s1578_s11 = scalar_lea.sflag [#allocation7], %s255_s16  ;;  %s1807_s3 = sld [smem:[#allocation33_spill]] }
  0x25   : > { %p1581_p12 = pnand %p949_p10, %p348_p11  ;;  %s297_s21 = scalar_lea.vmem [#allocation9], %s939_s18 }
  0x26   : > { %s1588_s29 = scalar_lea.sflag [#allocation10], %s255_s16  ;;  %p55_p13 = scmp.ne.s32.totalorder %s1418_s26, %s1414_s25 }
  0x27   : > { %s263_s12 = scalar_lea.hbm %s1805_s1, %s940_s19  ;;  %p61_p4 = scmp.ne.s32.totalorder %s1414_s25, %s1410_s24 }
  0x28   : > { %s265_s27 = sshll.u32 %s263_s12, 4  ;;  %s305_s12 = sshll.u32 %s297_s21, 4  ;;  %s266_s27 = int_to_ptr.hbm [resolvable:$true] %s265_s27  ;;  %s306_s12 = int_to_ptr.vmem [resolvable:$true] %s305_s12 }
  0x29   : > { %1014 = dma.hbm_to_vmem [thread:$0]  (!%p1012_p9), %s266_s27, 128, %s268_s6, %s1578_s11  }
  0x2a   : > { %s301_s20 = scalar_lea.hbm %s1807_s3, %s940_s19  ;;  %s41_s6 = sadd.s32 1, %s1434_s30 }
  0x2b   : > { %s303_s1 = sshll.u32 %s301_s20, 4  ;;  %s1834_s6 = smov (!%p1534_p0, %s41_s6), %s1434_s30  ;;  %s304_s1 = int_to_ptr.hbm [resolvable:$true] %s303_s1 }
  0x2c   : > { %1020 = dma.hbm_to_vmem [thread:$0]  (!%p1012_p9), %s304_s1, 128, %s306_s12, %s1588_s29  }
  0x2d   : > { %s48_s27 = sadd.s32 1, %s1418_s26  ;;  %p43_p3 = scmp.ge.s32.totalorder %s1834_s6, 4 }
  0x2e   : > { %p1602_p5 = por %p56_p1, %p55_p13  ;;  %s1607_s19 = sand.u32 1, %s1418_s26  }
  0x2f   : > { %s1836_s6 = smov (%p43_p3, %s1834_s6), 0  ;;  %p1613_p0 = por %p62_p2, %p61_p4 }
  0x30   : > { %1809 = sst [smem:[#allocation28_spill]] %s1836_s6  ;;  %s45_s10 = ssub.s32 %s1434_s30, %s1836_s6 }
  0x31   : > { %s1620_s24 = sshll.u32 %s1607_s19, 3  ;;  %p46_p1 = scmp.eq.s32.totalorder %s45_s10, 0 }
  0x32   : > { %s938_s16 = sshll.u32 %s1434_s30, 3  ;;  %s240_s13 = scalar_lea.vmem [#allocation3], %s1620_s24 }
  0x33   : > { %s248_s17 = sshll.u32 %s240_s13, 4  ;;  %s1812_s0 = sld [smem:[#allocation30_spill]]  ;;  %s249_s17 = int_to_ptr.vmem [resolvable:$true] %s248_s17 }
  0x34   : > { %s1625_s20 = scalar_select %p46_p1, %s1418_s26, %s48_s27  }
  0x35   : > { %p1634_p2 = pnand %p1027_p8, %p1602_p5  ;;  %s1814_s2 = sld [smem:[#allocation32_spill]] }
  0x36   : > { %1811 = sst [smem:[#allocation29_spill]] %s1625_s20  ;;  %s237_s21 = scalar_lea.sflag [#allocation4], %s1607_s19 }
  0x37   : > { %s278_s18 = scalar_lea.vmem [#allocation8], %s1620_s24  ;;  %s320_s10 = scalar_lea.hbm %s1782_s4, %s938_s16 }
  0x38   : > { %s286_s12 = sshll.u32 %s278_s18, 4  ;;  %s322_s13 = sshll.u32 %s320_s10, 4  ;;  %s287_s12 = int_to_ptr.vmem [resolvable:$true] %s286_s12  ;;  %s323_s13 = int_to_ptr.hbm [resolvable:$true] %s322_s13 }
  0x39   : > { %s244_s3 = scalar_lea.hbm %s1812_s0, %s938_s16  ;;  %s316_s20 = scalar_lea.vmem [#allocation11], %s1620_s24 }
  0x3a   : > { %s246_s15 = sshll.u32 %s244_s3, 4  ;;  %s354_s0 = sand.u32 (!%p1581_p12), 1, %s1414_s25   ;;  %s247_s15 = int_to_ptr.hbm [resolvable:$true] %s246_s15 }
  0x3b   : > { %s282_s27 = scalar_lea.hbm %s1814_s2, %s938_s16  ;;  %s324_s2 = sshll.u32 %s316_s20, 4  ;;  %s325_s2 = int_to_ptr.vmem [resolvable:$true] %s324_s2 }
  0x3c   : > { %1011 = dma.hbm_to_vmem [thread:$0]  (!%p1634_p2), %s247_s15, 128, %s249_s17, %s237_s21  }
  0x3d   : > { %s284_s3 = sshll.u32 %s282_s27, 4  ;;  %s339_s27 = scalar_lea.hbm %s1783_s5, %s938_s16  ;;  %s285_s3 = int_to_ptr.hbm [resolvable:$true] %s284_s3 }
  0x3e   : > { %1017 = dma.hbm_to_vmem [thread:$0]  (!%p1634_p2), %s285_s3, 128, %s287_s12, %s1578_s11  }
  0x3f   : > { %1023 = dma.hbm_to_vmem [thread:$0]  (!%p1634_p2), %s323_s13, 128, %s325_s2, %s1588_s29  }
  0x40   : > { %s335_s21 = scalar_lea.vmem [#allocation12], %s1620_s24  ;;  %s341_s26 = sshll.u32 %s339_s27, 4  ;;  %s342_s26 = int_to_ptr.hbm [resolvable:$true] %s341_s26 }
  0x41   : > { %s343_s18 = sshll.u32 %s335_s21, 4  ;;  %s332_s11 = scalar_lea.sflag [#allocation13], %s1607_s19  ;;  %s344_s18 = int_to_ptr.vmem [resolvable:$true] %s343_s18 }
  0x42   : > { %1026 = dma.hbm_to_vmem [thread:$0]  (!%p1634_p2), %s342_s26, 128, %s344_s18, %s332_s11  }
  0x43   : > { %352 = sbr.rel (%p1581_p12) target bundleno = 1632 (0x660), region = 44  ;;  %s1665_s30 = sshll.u32 (!%p1581_p12), %s354_s0, 3 }
  0x44   : > { %s355_s2 = scalar_lea.sflag (!%p1581_p12), [#allocation4], %s354_s0  ;;  %s358_s29 = scalar_lea.vmem (!%p1581_p12), [#allocation3], %s1665_s30 }
  0x48   : > { %1369 = dma.done.wait (%p1613_p0), %s355_s2, 128  }
  0x49   : > { %1371 = vsyncadd (%p1613_p0), %s355_s2, 4294967168  ;;  %s364_s26 = sand.u32 1, %s1531_s8   ;;  %s366_s6 = sand.u32 1, %s1402_s22  }
  0x4a   : > { %s1674_s9 = sshll.u32 %s366_s6, 3  ;;  %s365_s19 = scalar_lea.sflag [#allocation7], %s364_s26 }
  0x4b   : > { %s368_s24 = scalar_lea.vmem [#allocation6], %s1674_s9 }
  0x4c   : > { %1373 = dma.done.wait (%p1558_p7), %s365_s19, 128  }
  0x4d   : > { %1375 = vsyncadd (%p1558_p7), %s365_s19, 4294967168  ;;  %s378_s16 = scalar_lea.vmem [#allocation8], %s1665_s30 }
  0x4e   : > { %1377 = dma.done.wait (%p1613_p0), %s365_s19, 128  }
  0x4f   : > { %1379 = vsyncadd (%p1613_p0), %s365_s19, 4294967168  ;;  %s385_s20 = scalar_lea.sflag [#allocation10], %s364_s26  ;;  %s388_s3 = scalar_lea.vmem [#allocation9], %s1674_s9 }
  0x50   : > { %1381 = dma.done.wait (%p1558_p7), %s385_s20, 128  }
  0x51   : > { %1383 = vsyncadd (%p1558_p7), %s385_s20, 4294967168  ;;  %s398_s12 = scalar_lea.vmem [#allocation11], %s1665_s30 }
  0x52   : > { %1385 = dma.done.wait (%p1613_p0), %s385_s20, 128  }
  0x53   : > { %1387 = vsyncadd (%p1613_p0), %s385_s20, 4294967168  ;;  %s405_s10 = scalar_lea.sflag [#allocation13], %s354_s0  ;;  %s408_s13 = scalar_lea.vmem [#allocation12], %s1665_s30 }
  0x54   : > { %1389 = dma.done.wait (%p1613_p0), %s405_s10, 128  }
  0x55   : > { %1391 = vsyncadd (%p1613_p0), %s405_s10, 4294967168  ;;  %v473_v0 = vld [vmem:[%s388_s3] sm:$0xff]  ;;  %vm475_vm0 = vcmask 261120   ;;  %v472_v3 = vld [vmem:[%s358_s29] sm:$0xff]  ;;  %s1815_s14 = sld [smem:[#allocation23_spill]]  ;;  %vm550_vm1 = vcmask 64512  }
  0x56   : > { %v479_v1 = vmul.f32 %v473_v0, %v473_v0  ;;  %959 = vmatpush.xpose.msk.msra.mxu0 %vm475_vm0, %v473_v0  ;;  %v474_v4 = vmul.f32 %v472_v3, %v472_v3  ;;  %vm554_vm2 = vcmask 7168   ;;  %s956_s1 = sshll.u32 %s1426_s28, 2  ;;  %s1440_s17 = smov 0.0  }
  0x58   : > { %v480_v2 = vsel %vm475_vm0, %v479_v1, 0.0  ;;  %v476_v5 = vsel %vm475_vm0, %v474_v4, 0.0 }
  0x59   : > { %481 = vadd.xlane.f32.xlu0 %v480_v2  ;;  %960 = vmatmul.msk.f32.vlgmr.msra.gmra.mxu0 %vm475_vm0, %v472_v3 }
  0x5b   : > { %s1712_s15 = sadd.s32 %s1815_s14, %s956_s1  ;;  %p961_p7 = scmp.gt.s32.totalorder %s1426_s28, %s1815_s14 }
  0x5c   : > { %p1028_p6 = scmp.eq.s32.totalorder %s1712_s15, 0  ;;  %s1816_s11 = sld [smem:[#allocation23_spill]] (!%p961_p7) }
  0x5e   : > { %998 = sst [smem:[#allocation2]] (%p1028_p6), %s1440_s17 }
  0x5f   : > { %999 = sst [smem:[#allocation2 + $0x1]] (%p1028_p6), %s1440_s17 }
  0x60   : > { %1000 = sst [smem:[#allocation2 + $0x2]] (%p1028_p6), %s1440_s17 }
  0x61   : > { %477 = vadd.xlane.f32.xlu0 %v476_v5  ;;  %1001 = sst [smem:[#allocation2 + $0x3]] (%p1028_p6), %s1440_s17 }
  0x62   : > { %s958_s27 = sld [smem:[#allocation2 + $0x2]]  ;;  %p582_p8 = scmp.lt.s32.totalorder (!%p961_p7), %s1426_s28, %s1816_s11 }
  0x63   : > { %s584_s0 = sld [smem:[#allocation2]] (!%p961_p7) }
  0x64   : > { %s964_s2 = sld [smem:[#allocation2 + $0x1]] (!%p961_p7) }
  0xcc   : > { %v482_v6 = vpop.xlane.xlu0 %481 }
  0xcd   : > { %510 = vxpose.xlu1.b32.start.end [1/1] (short) (narrow) %v482_v6, 8 }
  0xd4   : > { %v1705_v9 = vpop.xlane.xlu0 %477 }
  0xd6   : > { %v507_v7 = vpop.f32.mrf.mxu0 }
  0xd7   : > { %v544_v11 = vmul.f32 2.0, %v507_v7 }
 0x171   : > { %v526_v8 = vpop.trf.xlu1 }
 0x172   : > { %v542_v10 = vperm.slane %v526_v8, 0 }
 0x174   : > { %v543_v12 = vadd.f32 %v542_v10, %v1705_v9 }
 0x176   : > { %v545_v13 = vsub.f32 %v543_v12, %v544_v11 }
 0x178   : > { %v546_v14 = vmax.f32 %v545_v13, 0.0 }
 0x17a   : > { %v547_v15 = vmul.f32 -0.03125, %v546_v14 }
 0x17c   : > { %v548_v16 = vmul.f32 1.442695, %v547_v15 }
 0x17e   : > { %1124 = vpow2.f32 %v548_v16 }
 0x184   : > { %v1125_v17 = vpop.eup %1124 }
 0x185   : > { %v551_v18 = vsel %vm550_vm1, %v1125_v17, 0.0 }
 0x186   : > { %552 = vadd.xlane.f32.xlu1 %v551_v18 }
 0x1f9   : > { %v553_v19 = vpop.xlane.xlu1 %552 }
 0x1fa   : > { %v555_v20 = vsel %vm554_vm2, %v553_v19, 0.0 }
 0x1fb   : > { %556 = vadd.xlane.f32.xlu2 %v555_v20 }
 0x26e   : > { %v557_v21 = vpop.xlane.xlu2 %556 }
 0x26f   : > { %v558_v22 = vrot.slane %v557_v21, 4 }
 0x271   : > { %v559_v23 = vadd.f32 %v558_v22, %v557_v21 }
 0x273   : > { %v560_v24 = vrot.slane %v559_v23, 2 }
 0x275   : > { %v561_v25 = vadd.f32 %v560_v24, %v559_v23 }
 0x277   : > { %v562_v26 = vrot.slane %v561_v25, 1 }
 0x279   : > { %v563_v27 = vadd.f32 %v562_v26, %v561_v25 }
 0x27b   : > { %977 = vpush %v563_v27 }
 0x2ab   : > { %571 = sbr.rel (%p961_p7) target bundleno = 1294 (0x50e), region = 76 }
 0x2ac   : > { %s978_s21 = spop %977 }
 0x2ad   : > { %s565_s18 = sadd.f32 %s978_s21, %s958_s27 }
 0x2af   : > { %567 = sst [smem:[#allocation2 + $0x2]] %s565_s18 }
 0x2b0   : > { %v572_v28 = vld [vmem:[%s368_s24] sm:$0xff]  ;;  %965 = vmatpush.xpose.msk.msra.mxu1 %vm475_vm0, %v473_v0  ;;  %v573_v31 = vld [vmem:[%s378_s16] sm:$0xff]  ;;  %s583_s29 = scalar_select %p582_p8, 2.0, 1.0 }
 0x2b1   : > { %v574_v29 = vmul.f32 %v572_v28, %v572_v28  ;;  %962 = vmatpush.xpose.msk.msra.mxu0 %vm475_vm0, %v572_v28  ;;  %v578_v32 = vmul.f32 %v573_v31, %v573_v31 }
 0x2b3   : > { %v575_v30 = vsel %vm475_vm0, %v574_v29, 0.0  ;;  %966 = vmatmul.msk.f32.vlgmr.msra.gmra.mxu1 %vm475_vm0, %v573_v31  ;;  %v579_v33 = vsel %vm475_vm0, %v578_v32, 0.0 }
 0x2b4   : > { %576 = vadd.xlane.f32.xlu0 %v575_v30  ;;  %963 = vmatmul.msk.f32.vlgmr.msra.gmra.mxu0 %vm475_vm0, %v472_v3 }
 0x2bc   : > { %580 = vadd.xlane.f32.xlu0 %v579_v33 }
 0x327   : > { %v577_v34 = vpop.xlane.xlu0 %576 }
 0x328   : > { %608 = vxpose.xlu1.b32.start.end [1/1] (short) (narrow) %v577_v34, 8 }
 0x32f   : > { %v581_v36 = vpop.xlane.xlu0 %580 }
 0x330   : > { %v686_v35 = vpop.f32.mrf.mxu1  ;;  %v689_v38 = vadd.f32 %v581_v36, %v542_v10 }
 0x331   : > { %v690_v37 = vmul.f32 2.0, %v686_v35  ;;  %v605_v45 = vpop.f32.mrf.mxu0 }
 0x332   : > { %v642_v48 = vmul.f32 2.0, %v605_v45 }
 0x333   : > { %v691_v39 = vsub.f32 %v689_v38, %v690_v37 }
 0x335   : > { %v692_v40 = vmax.f32 %v691_v39, 0.0 }
 0x337   : > { %v693_v41 = vmul.f32 -0.03125, %v692_v40 }
 0x339   : > { %v694_v42 = vmul.f32 1.442695, %v693_v41 }
 0x33b   : > { %1126 = vpow2.f32 %v694_v42 }
 0x341   : > { %v1127_v43 = vpop.eup %1126 }
 0x342   : > { %v696_v44 = vsel %vm550_vm1, %v1127_v43, 0.0 }
 0x343   : > { %697 = vadd.xlane.f32.xlu2 %v696_v44 }
 0x3b6   : > { %v698_v56 = vpop.xlane.xlu2 %697 }
 0x3b7   : > { %v699_v57 = vsel %vm554_vm2, %v698_v56, 0.0 }
 0x3b8   : > { %700 = vadd.xlane.f32.xlu0 %v699_v57 }
 0x3cc   : > { %v624_v46 = vpop.trf.xlu1 }
 0x3cd   : > { %v640_v47 = vperm.slane %v624_v46, 0 }
 0x3cf   : > { %v641_v49 = vadd.f32 %v640_v47, %v1705_v9 }
 0x3d1   : > { %v643_v50 = vsub.f32 %v641_v49, %v642_v48 }
 0x3d3   : > { %v644_v51 = vmax.f32 %v643_v50, 0.0 }
 0x3d5   : > { %v645_v52 = vmul.f32 -0.03125, %v644_v51 }
 0x3d7   : > { %v646_v53 = vmul.f32 1.442695, %v645_v52 }
 0x3d9   : > { %1128 = vpow2.f32 %v646_v53 }
 0x3df   : > { %v1129_v54 = vpop.eup %1128 }
 0x3e0   : > { %v648_v55 = vsel %vm550_vm1, %v1129_v54, 0.0 }
 0x3e1   : > { %649 = vadd.xlane.f32.xlu1 %v648_v55 }
 0x42b   : > { %v701_v60 = vpop.xlane.xlu0 %700 }
 0x42c   : > { %v702_v61 = vrot.slane %v701_v60, 4 }
 0x42e   : > { %v703_v62 = vadd.f32 %v702_v61, %v701_v60 }
 0x430   : > { %v704_v63 = vrot.slane %v703_v62, 2 }
 0x432   : > { %v705_v3 = vadd.f32 %v704_v63, %v703_v62 }
 0x434   : > { %v706_v6 = vrot.slane %v705_v3, 1 }
 0x436   : > { %v707_v9 = vadd.f32 %v706_v6, %v705_v3 }
 0x454   : > { %v650_v58 = vpop.xlane.xlu1 %649 }
 0x455   : > { %v651_v59 = vsel %vm554_vm2, %v650_v58, 0.0 }
 0x456   : > { %652 = vadd.xlane.f32.xlu2 %v651_v59 }
 0x4c9   : > { %v653_v0 = vpop.xlane.xlu2 %652 }
 0x4ca   : > { %v654_v1 = vrot.slane %v653_v0, 4 }
 0x4cc   : > { %v655_v2 = vadd.f32 %v654_v1, %v653_v0 }
 0x4ce   : > { %v656_v4 = vrot.slane %v655_v2, 2 }
 0x4d0   : > { %v657_v5 = vadd.f32 %v656_v4, %v655_v2 }
 0x4d2   : > { %v658_v7 = vrot.slane %v657_v5, 1 }
 0x4d4   : > { %v659_v8 = vadd.f32 %v658_v7, %v657_v5 }
 0x4d6   : > { %979 = vpush %v659_v8 }
 0x4d7   : > { %981 = vpush %v707_v9 }
 0x507   : > { %s980_s26 = spop %979 }
 0x508   : > { %s661_s6 = smul.f32 %s980_s26, %s583_s29  ;;  %s982_s9 = spop %981 }
 0x509   : > { %s709_s19 = smul.f32 %s982_s9, %s583_s29 }
 0x50a   : > { %s662_s24 = sadd.f32 %s661_s6, %s584_s0 }
 0x50b   : > { %s710_s16 = sadd.f32 %s964_s2, %s709_s19 }
 0x50c   : > { %664 = sst [smem:[#allocation2]] %s662_s24 }
 0x50d   : > { %712 = sst [smem:[#allocation2 + $0x1]] %s710_s16 }
 0x50e PF: > { %s1817_s20 = sld [smem:[#allocation23_spill]] }
 0x514   : > { %p967_p9 = scmp.ne.s32.totalorder %s1817_s20, 0 }
 0x515   : > { %s968_s28 = sld [smem:[#allocation2 + $0x3]] (!%p967_p9) }
 0x516   : > { %716 = sbr.rel (%p967_p9) target bundleno = 1611 (0x64b), region = 80 }
 0x51b   : > { %v717_v10 = vld [vmem:[%s398_s12] sm:$0xff]  ;;  %v718_v11 = vld [vmem:[%s408_s13] sm:$0xff]  ;;  %vm722_vm3 = vcmask 523264  }
 0x51c   : > { %v719_v12 = vsub.f32 %v717_v10, %v718_v11 }
 0x51e   : > { %v721_v13 = vmul.f32 %v719_v12, %v719_v12 }
 0x520   : > { %v723_v14 = vsel %vm722_vm3, %v721_v13, 0.0 }
 0x521   : > { %724 = vadd.xlane.f32.xlu0 %v723_v14 }
 0x594   : > { %v725_v15 = vpop.xlane.xlu0 %724 }
 0x595   : > { %v726_v16 = vsel %vm554_vm2, %v725_v15, 0.0 }
 0x596   : > { %727 = vadd.xlane.f32.xlu0 %v726_v16 }
 0x609   : > { %v728_v17 = vpop.xlane.xlu0 %727 }
 0x60a   : > { %v729_v18 = vrot.slane %v728_v17, 4 }
 0x60c   : > { %v730_v19 = vadd.f32 %v729_v18, %v728_v17 }
 0x60e   : > { %v731_v20 = vrot.slane %v730_v19, 2 }
 0x610   : > { %v732_v21 = vadd.f32 %v731_v20, %v730_v19 }
 0x612   : > { %v733_v22 = vrot.slane %v732_v21, 1 }
 0x614   : > { %v734_v23 = vadd.f32 %v733_v22, %v732_v21 }
 0x616   : > { %983 = vpush %v734_v23 }
 0x647   : > { %s984_s30 = spop %983 }
 0x648   : > { %s736_s3 = sadd.f32 %s984_s30, %s968_s28 }
 0x64a   : > { %738 = sst [smem:[#allocation2 + $0x3]] %s736_s3 }
 0x64b PF: > { %s743_s12 = sld [smem:[#allocation2]]  ;;  %p1029_p10 = scmp.eq.s32.totalorder %s1712_s15, 15 }
 0x64c   : > { %s970_s10 = sld [smem:[#allocation2 + $0x1]]  ;;  %p1030_p11 = scmp.eq.s32.totalorder %s1531_s8, 15 }
 0x64d   : > { %s971_s13 = sld [smem:[#allocation2 + $0x2]]  ;;  %s1441_s6 = smov [#allocation14]  }
 0x64e   : > { %s972_s14 = sld [smem:[#allocation2 + $0x3]] }
 0x64f   : > { %s1818_s18 = sld [smem:[#allocation34_spill]] }
 0x652   : > { %s745_s1 = sadd.f32 %s970_s10, %s743_s12 }
 0x653   : > { %s747_s17 = smul.f32 2.0, %s971_s13 }
 0x654   : > { %s751_s2 = smul.f32 0.00048828125, %s972_s14 }
 0x655   : > { %s761_s11 = sshll.u32 %s1818_s18, 4  ;;  %s748_s0 = ssub.f32 %s745_s1, %s747_s17  ;;  %s762_s11 = int_to_ptr.hbm [resolvable:$true] %s761_s11 }
 0x657   : > { %s749_s29 = smul.f32 0.0009765625, %s748_s0 }
 0x659   : > { %s752_s26 = sadd.f32 %s751_s2, %s749_s29 }
 0x65b   : > { %1003 = sst [smem:[#allocation14]] (%p1029_p10), %s752_s26 }
 0x65c   : > { %1005 = dma.smem_to_hbm (%p1030_p11), %s1441_s6, 16, %s762_s11, [#allocation5]  }
 0x65d   : > { %1393 = dma.done.wait (%p1030_p11), [#allocation5], 16  }
 0x65e   : > { %1395 = vsyncadd (%p1030_p11), [#allocation5], 4294967280 }
 0x65f   : > { %770 = sfence }
 0x660 PF: > { %s29_s7 = sadd.s32 1, %s1438_s7   ;;  %s1819_s9 = sld [smem:[#allocation27_spill]] }
 0x661   : > { %p26_p12 = scmp.ge.s32.totalorder %s29_s7, 18   ;;  %s1820_s19 = sld [smem:[#allocation22_spill]] }
 0x662   : > { %s1821_s26 = sld [smem:[#allocation29_spill]]  ;;  %s1826_s21 = smov %s1402_s22 }
 0x663   : > { %s1822_s27 = sld [smem:[#allocation24_spill]]  ;;  %s1827_s22 = smov %s1406_s23 }
 0x664   : > { %s1823_s28 = sld [smem:[#allocation25_spill]]  ;;  %s1829_s24 = smov %s1414_s25 }
 0x665   : > { %s1824_s29 = sld [smem:[#allocation26_spill]]  ;;  %28 = sbr.rel (!%p26_p12) target bundleno = 20 (0x14), region = 167 }
 0x666   : > { %s1825_s30 = sld [smem:[#allocation28_spill]]  ;;  %s1828_s23 = smov %s1819_s9 }
 0x667   : > { %s1830_s25 = smov %s1820_s19 }
 0x66a   :  { %776 = vsyncpa [#allocation4], 1 }
 0x66b   :  { %778 = vsyncpa [#allocation4 + $0x1], 1 }
 0x66c   :  { %779 = vsyncpa [#allocation7], 1 }
 0x66d   :  { %781 = vsyncpa [#allocation7 + $0x1], 1 }
 0x66e   :  { %782 = vsyncpa [#allocation10], 1 }
 0x66f   :  { %784 = vsyncpa [#allocation10 + $0x1], 1 }
 0x670   :  { %785 = vsyncpa [#allocation13], 1 }
 0x671   :  { %787 = vsyncpa [#allocation13 + $0x1], 1 }
 0x672   :  { %788 = vsyncpa [#allocation5], 1 }
 0x673   :  { %790 = vsyncpa [#allocation5 + $0x1], 1 }

</bundles_post_ra>
